<compile_context>
chip_gen: v7x
topology: tpu7x:2x2x1
jax: 0.10.0
libtpu: 0.0.40
codegen_flags: <defaults>
</compile_context>

<pallas_src>
import functools

import jax
import jax.numpy as jnp
from jax.experimental import pallas as pl
from jax.experimental.pallas import tpu as pltpu


def _round_up(v, m):
    return (v + m - 1) // m * m


def _padded_vmem_bytes(shape, dtype):
    """Approximate VMEM bytes of an array after (sublane, lane) tile padding."""
    itemsize = jnp.dtype(dtype).itemsize
    sublane = max(1, 32 // itemsize)          # 8 for f32, 16 for bf16
    s = (1, 1) + tuple(int(d) for d in shape)  # ensure >= 2 dims
    lead = 1
    for d in s[:-2]:
        lead *= d
    return lead * _round_up(s[-2], sublane) * _round_up(s[-1], 128) * itemsize


def _stacked_gru_kernel(x_ref, h0_ref, w_ref, b_ref, h1_ref, *,
                        num_layers, hidden, input_size):
    """Whole StackedGRU step in one kernel invocation.

    x_ref : (Bp, In)       bf16  layer-0 input
    h0_ref: (L, Bp, H)     f32   previous hidden state per layer
    w_ref : (L, Kmax, Np)  bf16  packed [Wi; Wh] rows, 4 gate blocks along N
    b_ref : (L, 1, Np)     f32   packed biases (r/z blocks hold bi + bh)
    h1_ref: (L, Bp, H)     f32   new hidden state per layer (output)

    Gate blocks (stride H along the N/lane dim of the single matmul):
      g0 = x Wir + h Whr + (bir + bhr)   -> r = sigmoid(g0)
      g1 = x Wiz + h Whz + (biz + bhz)   -> z = sigmoid(g1)
      g2 = x Win + bin
      g3 =         h Whn + bhn           -> n = tanh(g2 + r * g3)
      h' = (1 - z) * n + z * h
    """
    inp = x_ref[...]                                        # (Bp, In) bf16
    for layer in range(num_layers):                         # static unroll
        in_size = input_size if layer == 0 else hidden
        h = h0_ref[layer]                                   # (Bp, H) f32
        cat = jnp.concatenate([inp, h.astype(jnp.bfloat16)], axis=-1)
        w = w_ref[layer, :in_size + hidden, :]              # (K_l, Np) bf16
        # Single bf16 x bf16 -> f32 MXU matmul + fused bias add.
        g = jnp.dot(cat, w, preferred_element_type=jnp.float32) + b_ref[layer]
        r = jax.nn.sigmoid(g[:, 0 * hidden:1 * hidden])
        z = jax.nn.sigmoid(g[:, 1 * hidden:2 * hidden])
        n = jnp.tanh(g[:, 2 * hidden:3 * hidden] + r * g[:, 3 * hidden:4 * hidden])
        h_new = (1.0 - z) * n + z * h                       # (Bp, H) f32
        h1_ref[layer] = h_new
        inp = h_new.astype(jnp.bfloat16)                    # next layer input


def init_stacked_gru_params(key, num_layers, input_size, rnn_size):
    """PyTorch nn.GRUCell layout per layer: w_ih (3H, in), w_hh (3H, H),
    b_ih (3H,), b_hh (3H,), gate order (r, z, n)."""
    params = []
    k = 1.0 / jnp.sqrt(rnn_size)
    in_size = input_size
    for layer in range(num_layers):
        keys = jax.random.split(jax.random.fold_in(key, layer), 4)
        params.append({
            "w_ih": jax.random.uniform(keys[0], (3 * rnn_size, in_size), jnp.float32, -k, k),
            "w_hh": jax.random.uniform(keys[1], (3 * rnn_size, rnn_size), jnp.float32, -k, k),
            "b_ih": jax.random.uniform(keys[2], (3 * rnn_size,), jnp.float32, -k, k),
            "b_hh": jax.random.uniform(keys[3], (3 * rnn_size,), jnp.float32, -k, k),
        })
        in_size = rnn_size
    return params


def pack_stacked_gru_params(params, input_size, rnn_size,
                            weight_dtype=jnp.bfloat16):
    """Pack each layer into ONE matmul operand.

    Rows   : [0:in_size) = input weights, [in_size:in_size+H) = hidden weights.
    Columns: 4 gate blocks at stride H:
      block 0 (r): Wi_r over input rows, Wh_r over hidden rows   (bias bi_r+bh_r)
      block 1 (z): Wi_z / Wh_z                                   (bias bi_z+bh_z)
      block 2    : Wi_n over input rows, zeros over hidden rows  (bias bi_n)
      block 3    : zeros over input rows, Wh_n over hidden rows  (bias bh_n)
    Total N padded to a multiple of 128 (for H=32 exactly 128, no padding).
    """
    L = len(params)
    H = rnn_size
    Kmax = max(input_size, H) + H
    Np = _round_up(4 * H, 128)

    w = jnp.zeros((L, Kmax, Np), weight_dtype)
    b = jnp.zeros((L, 1, Np), jnp.float32)

    for l, p in enumerate(params):
        in_size = input_size if l == 0 else H
        w_ih, w_hh = p["w_ih"], p["w_hh"]
        b_ih, b_hh = p["b_ih"], p["b_hh"]
        # r and z gates: input + hidden contributions share one gate block.
        for g in range(2):
            wi_g = w_ih[g * H:(g + 1) * H, :].T.astype(weight_dtype)   # (in_size, H)
            wh_g = w_hh[g * H:(g + 1) * H, :].T.astype(weight_dtype)   # (H, H)
            w = w.at[l, :in_size, g * H:(g + 1) * H].set(wi_g)
            w = w.at[l, in_size:in_size + H, g * H:(g + 1) * H].set(wh_g)
            b = b.at[l, 0, g * H:(g + 1) * H].set(b_ih[g * H:(g + 1) * H]
                                                  + b_hh[g * H:(g + 1) * H])
        # n gate: input part (block 2) and hidden part (block 3) kept separate.
        wi_n = w_ih[2 * H:3 * H, :].T.astype(weight_dtype)
        wh_n = w_hh[2 * H:3 * H, :].T.astype(weight_dtype)
        w = w.at[l, :in_size, 2 * H:3 * H].set(wi_n)
        w = w.at[l, in_size:in_size + H, 3 * H:4 * H].set(wh_n)
        b = b.at[l, 0, 2 * H:3 * H].set(b_ih[2 * H:3 * H])
        b = b.at[l, 0, 3 * H:4 * H].set(b_hh[2 * H:3 * H])

    return {"w": w, "b": b, "num_layers": L, "rnn_size": H,
            "input_size": input_size, "Kmax": Kmax, "Np": Np}


def stacked_gru_forward(packed, x, h0):
    """StackedGRU.forward: x (B, input_size), h0 (num_layers, B, rnn_size).
    Returns (output (B, rnn_size), h1 (num_layers, B, rnn_size))."""
    L = packed["num_layers"]
    H = packed["rnn_size"]
    In = packed["input_size"]
    B = x.shape[0]
    Bp = _round_up(B, 8)   # sublane-align the batch dim

    x_p = jnp.zeros((Bp, In), jnp.bfloat16).at[:B, :].set(x.astype(jnp.bfloat16))
    h0_p = jnp.zeros((L, Bp, H), jnp.float32).at[:, :B, :].set(h0.astype(jnp.float32))

    kernel = functools.partial(_stacked_gru_kernel,
                               num_layers=L, hidden=H, input_size=In)

    # Right-size the VMEM request from the actual tile-padded footprint
    # (+ headroom); never request v7x's entire 64 MiB physical VMEM.
    footprint = (_padded_vmem_bytes(x_p.shape, x_p.dtype)
                 + _padded_vmem_bytes(h0_p.shape, h0_p.dtype)
                 + _padded_vmem_bytes(packed["w"].shape, packed["w"].dtype)
                 + _padded_vmem_bytes(packed["b"].shape, packed["b"].dtype)
                 + _padded_vmem_bytes((L, Bp, H), jnp.float32))
    vmem_limit = int(min(48 << 20, max(8 << 20, 2 * footprint + (1 << 20))))

    h1_p = pl.pallas_call(
        kernel,
        out_shape=jax.ShapeDtypeStruct((L, Bp, H), jnp.float32),
        compiler_params=pltpu.CompilerParams(vmem_limit_bytes=vmem_limit),
    )(x_p, h0_p, packed["w"], packed["b"])

    h1 = h1_p[:, :B, :]
    out = h1[L - 1]   # last layer output is not dropout'd in the reference
    return out, h1


# ----------------------------- pure-JAX reference ----------------------------

def _gru_cell_ref(x, h, p):
    H = h.shape[1]
    gi = x @ p["w_ih"].T + p["b_ih"]
    gh = h @ p["w_hh"].T + p["b_hh"]
    r = jax.nn.sigmoid(gi[:, :H] + gh[:, :H])
    z = jax.nn.sigmoid(gi[:, H:2 * H] + gh[:, H:2 * H])
    n = jnp.tanh(gi[:, 2 * H:] + r * gh[:, 2 * H:])
    return (1.0 - z) * n + z * h


def _stacked_gru_ref(params, x, h0):
    h1, inp = [], x
    for i, p in enumerate(params):
        hi = _gru_cell_ref(inp, h0[i], p)
        inp = hi                     # dropout between layers: identity (eval)
        h1.append(hi)
    return inp, jnp.stack(h1)


if __name__ == "__main__":
    num_layers = 2
    batch = 8
    input_size = 32
    rnn_size = 32

    key = jax.random.PRNGKey(0)
    k_param, k_x, k_h = jax.random.split(key, 3)

    params = init_stacked_gru_params(k_param, num_layers, input_size, rnn_size)
    # Kernel consumes bf16 weights; round-trip once so kernel and reference see
    # identical weight values (biases stay f32).
    params = [dict(p,
                   w_ih=p["w_ih"].astype(jnp.bfloat16).astype(jnp.float32),
                   w_hh=p["w_hh"].astype(jnp.bfloat16).astype(jnp.float32))
              for p in params]
    packed = pack_stacked_gru_params(params, input_size, rnn_size)

    x = jax.random.normal(k_x, (batch, input_size), jnp.float32)
    h0 = jax.random.normal(k_h, (num_layers, batch, rnn_size), jnp.float32)
    # Pre-round activations to bf16-representable values so the kernel's bf16
    # MXU path and the f32 reference start from identical inputs.
    x = x.astype(jnp.bfloat16).astype(jnp.float32)
    h0 = h0.astype(jnp.bfloat16).astype(jnp.float32)

    out, h1 = stacked_gru_forward(packed, x, h0)
    out = jax.block_until_ready(out)
    h1 = jax.block_until_ready(h1)

    out_ref, h1_ref = _stacked_gru_ref(params, x, h0)

    assert out.shape == (batch, rnn_size)
    assert h1.shape == (num_layers, batch, rnn_size)
    # The kernel feeds bf16 activations to the MXU (f32 accumulate), so the
    # comparison tolerance is bf16-level rather than 1e-4.
    assert jnp.allclose(out, out_ref, atol=2e-2, rtol=2e-2), \
        float(jnp.max(jnp.abs(out - out_ref)))
    assert jnp.allclose(h1, h1_ref, atol=2e-2, rtol=2e-2), \
        float(jnp.max(jnp.abs(h1 - h1_ref)))

    print("KERNEL_OK")
</pallas_src>

<mosaic_0001>
module attributes {stable_mosaic.version = 11 : i64} {
  func.func @_stacked_gru_kernel(%arg0: memref<8x32xbf16, #tpu.memory_space<vmem>>, %arg1: memref<2x8x32xf32, #tpu.memory_space<vmem>>, %arg2: memref<2x64x128xbf16, #tpu.memory_space<vmem>>, %arg3: memref<2x1x128xf32, #tpu.memory_space<vmem>>, %arg4: memref<2x8x32xf32, #tpu.memory_space<vmem>>) attributes {dimension_semantics = [], scalar_prefetch = 0 : i64, scratch_operands = 0 : i64, tpu.core_type = #tpu.core_type<tc>} {
    %c0 = arith.constant 0 : index
    %c0_0 = arith.constant 0 : index
    %0 = vector.load %arg0[%c0, %c0_0] : memref<8x32xbf16, #tpu.memory_space<vmem>>, vector<8x32xbf16>
    %c0_1 = arith.constant 0 : index
    %c0_2 = arith.constant 0 : index
    %c0_3 = arith.constant 0 : index
    %1 = vector.load %arg1[%c0_1, %c0_2, %c0_3] : memref<2x8x32xf32, #tpu.memory_space<vmem>>, vector<1x8x32xf32>
    %2 = vector.shape_cast %1 : vector<1x8x32xf32> to vector<8x32xf32>
    %3 = arith.truncf %2 : vector<8x32xf32> to vector<8x32xbf16>
    %4 = tpu.concatenate %0, %3 in 1 : vector<8x32xbf16>, vector<8x32xbf16> -> vector<8x64xbf16>
    %c0_4 = arith.constant 0 : index
    %c0_5 = arith.constant 0 : index
    %c0_6 = arith.constant 0 : index
    %5 = vector.load %arg2[%c0_4, %c0_5, %c0_6] : memref<2x64x128xbf16, #tpu.memory_space<vmem>>, vector<1x64x128xbf16>
    %6 = vector.shape_cast %5 : vector<1x64x128xbf16> to vector<64x128xbf16>
    %cst = arith.constant dense<0.000000e+00> : vector<8x128xf32>
    %7 = tpu.matmul %4, %6, %cst {dimension_numbers = #tpu.dot_dimension_numbers<[1], [0], [0], [1], [0, 0, 1, 1], [], []>} : vector<8x64xbf16>, vector<64x128xbf16>, vector<8x128xf32> -> vector<8x128xf32>
    %c0_7 = arith.constant 0 : index
    %c0_8 = arith.constant 0 : index
    %c0_9 = arith.constant 0 : index
    %8 = vector.load %arg3[%c0_7, %c0_8, %c0_9] : memref<2x1x128xf32, #tpu.memory_space<vmem>>, vector<1x1x128xf32>
    %9 = vector.shape_cast %8 : vector<1x1x128xf32> to vector<1x128xf32>
    %10 = vector.broadcast %9 : vector<1x128xf32> to vector<8x128xf32>
    %11 = arith.addf %7, %10 : vector<8x128xf32>
    %12 = vector.extract_strided_slice %11 {offsets = [0, 0], sizes = [8, 32], strides = [1, 1]} : vector<8x128xf32> to vector<8x32xf32>
    %13 = arith.negf %12 : vector<8x32xf32>
    %14 = math.exp %13 : vector<8x32xf32>
    %cst_10 = arith.constant 1.000000e+00 : f32
    %15 = vector.broadcast %cst_10 : f32 to vector<8x32xf32>
    %16 = arith.addf %15, %14 : vector<8x32xf32>
    %17 = arith.divf %15, %16 : vector<8x32xf32>
    %18 = vector.extract_strided_slice %11 {offsets = [0, 32], sizes = [8, 32], strides = [1, 1]} : vector<8x128xf32> to vector<8x32xf32>
    %19 = arith.negf %18 : vector<8x32xf32>
    %20 = math.exp %19 : vector<8x32xf32>
    %cst_11 = arith.constant 1.000000e+00 : f32
    %21 = vector.broadcast %cst_11 : f32 to vector<8x32xf32>
    %22 = arith.addf %21, %20 : vector<8x32xf32>
    %23 = arith.divf %21, %22 : vector<8x32xf32>
    %24 = vector.extract_strided_slice %11 {offsets = [0, 64], sizes = [8, 32], strides = [1, 1]} : vector<8x128xf32> to vector<8x32xf32>
    %25 = vector.extract_strided_slice %11 {offsets = [0, 96], sizes = [8, 32], strides = [1, 1]} : vector<8x128xf32> to vector<8x32xf32>
    %26 = arith.mulf %17, %25 : vector<8x32xf32>
    %27 = arith.addf %24, %26 : vector<8x32xf32>
    %28 = math.tanh %27 : vector<8x32xf32>
    %cst_12 = arith.constant 1.000000e+00 : f32
    %29 = vector.broadcast %cst_12 : f32 to vector<8x32xf32>
    %30 = arith.subf %29, %23 : vector<8x32xf32>
    %31 = arith.mulf %30, %28 : vector<8x32xf32>
    %32 = arith.mulf %23, %2 : vector<8x32xf32>
    %33 = arith.addf %31, %32 : vector<8x32xf32>
    %c0_13 = arith.constant 0 : index
    %c0_14 = arith.constant 0 : index
    %c0_15 = arith.constant 0 : index
    %34 = vector.load %arg4[%c0_13, %c0_14, %c0_15] : memref<2x8x32xf32, #tpu.memory_space<vmem>>, vector<1x8x32xf32>
    %35 = vector.shape_cast %34 : vector<1x8x32xf32> to vector<8x32xf32>
    %36 = vector.shape_cast %33 : vector<8x32xf32> to vector<1x8x32xf32>
    tpu.vector_store %arg4[%c0_13, %c0_14, %c0_15], %36 {strides = array<i32>} : memref<2x8x32xf32, #tpu.memory_space<vmem>>, vector<1x8x32xf32>,
    %37 = arith.truncf %33 : vector<8x32xf32> to vector<8x32xbf16>
    %c1 = arith.constant 1 : index
    %c0_16 = arith.constant 0 : index
    %c0_17 = arith.constant 0 : index
    %38 = vector.load %arg1[%c1, %c0_16, %c0_17] : memref<2x8x32xf32, #tpu.memory_space<vmem>>, vector<1x8x32xf32>
    %39 = vector.shape_cast %38 : vector<1x8x32xf32> to vector<8x32xf32>
    %40 = arith.truncf %39 : vector<8x32xf32> to vector<8x32xbf16>
    %41 = tpu.concatenate %37, %40 in 1 : vector<8x32xbf16>, vector<8x32xbf16> -> vector<8x64xbf16>
    %c1_18 = arith.constant 1 : index
    %c0_19 = arith.constant 0 : index
    %c0_20 = arith.constant 0 : index
    %42 = vector.load %arg2[%c1_18, %c0_19, %c0_20] : memref<2x64x128xbf16, #tpu.memory_space<vmem>>, vector<1x64x128xbf16>
    %43 = vector.shape_cast %42 : vector<1x64x128xbf16> to vector<64x128xbf16>
    %cst_21 = arith.constant dense<0.000000e+00> : vector<8x128xf32>
    %44 = tpu.matmul %41, %43, %cst_21 {dimension_numbers = #tpu.dot_dimension_numbers<[1], [0], [0], [1], [0, 0, 1, 1], [], []>} : vector<8x64xbf16>, vector<64x128xbf16>, vector<8x128xf32> -> vector<8x128xf32>
    %c1_22 = arith.constant 1 : index
    %c0_23 = arith.constant 0 : index
    %c0_24 = arith.constant 0 : index
    %45 = vector.load %arg3[%c1_22, %c0_23, %c0_24] : memref<2x1x128xf32, #tpu.memory_space<vmem>>, vector<1x1x128xf32>
    %46 = vector.shape_cast %45 : vector<1x1x128xf32> to vector<1x128xf32>
    %47 = vector.broadcast %46 : vector<1x128xf32> to vector<8x128xf32>
    %48 = arith.addf %44, %47 : vector<8x128xf32>
    %49 = vector.extract_strided_slice %48 {offsets = [0, 0], sizes = [8, 32], strides = [1, 1]} : vector<8x128xf32> to vector<8x32xf32>
    %50 = arith.negf %49 : vector<8x32xf32>
    %51 = math.exp %50 : vector<8x32xf32>
    %cst_25 = arith.constant 1.000000e+00 : f32
    %52 = vector.broadcast %cst_25 : f32 to vector<8x32xf32>
    %53 = arith.addf %52, %51 : vector<8x32xf32>
    %54 = arith.divf %52, %53 : vector<8x32xf32>
    %55 = vector.extract_strided_slice %48 {offsets = [0, 32], sizes = [8, 32], strides = [1, 1]} : vector<8x128xf32> to vector<8x32xf32>
    %56 = arith.negf %55 : vector<8x32xf32>
    %57 = math.exp %56 : vector<8x32xf32>
    %cst_26 = arith.constant 1.000000e+00 : f32
    %58 = vector.broadcast %cst_26 : f32 to vector<8x32xf32>
    %59 = arith.addf %58, %57 : vector<8x32xf32>
    %60 = arith.divf %58, %59 : vector<8x32xf32>
    %61 = vector.extract_strided_slice %48 {offsets = [0, 64], sizes = [8, 32], strides = [1, 1]} : vector<8x128xf32> to vector<8x32xf32>
    %62 = vector.extract_strided_slice %48 {offsets = [0, 96], sizes = [8, 32], strides = [1, 1]} : vector<8x128xf32> to vector<8x32xf32>
    %63 = arith.mulf %54, %62 : vector<8x32xf32>
    %64 = arith.addf %61, %63 : vector<8x32xf32>
    %65 = math.tanh %64 : vector<8x32xf32>
    %cst_27 = arith.constant 1.000000e+00 : f32
    %66 = vector.broadcast %cst_27 : f32 to vector<8x32xf32>
    %67 = arith.subf %66, %60 : vector<8x32xf32>
    %68 = arith.mulf %67, %65 : vector<8x32xf32>
    %69 = arith.mulf %60, %39 : vector<8x32xf32>
    %70 = arith.addf %68, %69 : vector<8x32xf32>
    %c1_28 = arith.constant 1 : index
    %c0_29 = arith.constant 0 : index
    %c0_30 = arith.constant 0 : index
    %71 = vector.load %arg4[%c1_28, %c0_29, %c0_30] : memref<2x8x32xf32, #tpu.memory_space<vmem>>, vector<1x8x32xf32>
    %72 = vector.shape_cast %71 : vector<1x8x32xf32> to vector<8x32xf32>
    %73 = vector.shape_cast %70 : vector<8x32xf32> to vector<1x8x32xf32>
    tpu.vector_store %arg4[%c1_28, %c0_29, %c0_30], %73 {strides = array<i32>} : memref<2x8x32xf32, #tpu.memory_space<vmem>>, vector<1x8x32xf32>,
    return
  }
}

</mosaic_0001>

<bundles_post_ra>
// kernel: tpu_custom_call.1
= control target key start
LH: loop header
LB: loop body
LE: loop exit
PB: predicated region body
PF: predicated region fallthrough
CT: control target
= control target key end

     0   :  { %9 = vsyncpa [#allocation3], 0  ;;  %s626_s0 = inlined_call_operand.hbm [shape: bf16[8,32], index: 0, kind: input, shape index: {}]   ;;  %s627_s1 = inlined_call_operand.hbm [shape: f32[2,8,32], index: 1, kind: input, shape index: {}]   ;;  %s628_s2 = inlined_call_operand.hbm [shape: bf16[2,64,128], index: 2, kind: input, shape index: {}]   ;;  %s629_s3 = inlined_call_operand.vmem [shape: f32[2,1,128], index: 3, kind: input, shape index: {}]   ;;  %s630_s4 = inlined_call_operand.hbm [shape: f32[2,8,32], index: 4, kind: output, shape index: {}]  }
   0x1   :  { %10 = vsyncpa [#allocation6], 0 }
   0x2   :  { %11 = vsyncpa [#allocation4], 0  ;;  %s508_s15 = smov [#allocation5]   ;;  %s414_s19 = scalar_lea.hbm %s627_s1, 256 }
   0x3   :  { %s27_s16 = sshll.u32 %s508_s15, 4  ;;  %p415_p0 = scmp.ne.s32.totalorder %s627_s1, %s414_s19  ;;  %s28_s16 = int_to_ptr.vmem [resolvable:$true] %s27_s16 }
   0x4   :  { %p418_p1 = scmp.lt.u32.totalorder %s414_s19, %s627_s1 }
   0x6   :  { %p420_p2 = pnand %p418_p1, %p415_p0 }
   0x8   :  { %423 = shalt.err (!%p420_p2)
}
   0x9   :  { %s424_s24 = scalar_lea.vmem %s28_s16, 256  ;;  %p429_p4 = scmp.lt.s32.totalorder %s28_s16, %s28_s16 }
   0xa   :  { %p425_p3 = scmp.ne.s32.totalorder %s28_s16, %s424_s24  ;;  %p430_p5 = scmp.lt.s32.totalorder %s424_s24, %s424_s24 }
   0xc   :  { %p431_p6 = por %p430_p5, %p429_p4 }
   0xe   :  { %p432_p7 = pnand %p431_p6, %p425_p3 }
  0x10   :  { %435 = shalt.err (!%p432_p7)
}
  0x11   :  { %s509_s25 = smov 128   ;;  %s510_s26 = smov 8  }
  0x12   :  { %33 = dma.hbm_to_vmem [thread:$0]  %s627_s1, 256, %s28_s16, [#allocation6], %s509_s25, %s509_s25, %s510_s26  }
  0x13   :  { %s511_s29 = smov [#allocation2]   ;;  %s512_s5 = smov [#allocation7]  }
  0x14   :  { %s18_s30 = sshll.u32 %s511_s29, 4  ;;  %s39_s6 = sshll.u32 %s512_s5, 4  ;;  %s19_s30 = int_to_ptr.vmem [resolvable:$true] %s18_s30  ;;  %s40_s6 = int_to_ptr.vmem [resolvable:$true] %s39_s6 }
  0x15   :  { %s436_s9 = scalar_lea.hbm %s626_s0, 64 }
  0x16   :  { %p437_p8 = scmp.ne.s32.totalorder %s626_s0, %s436_s9  ;;  %p440_p9 = scmp.lt.u32.totalorder %s436_s9, %s626_s0 }
  0x18   :  { %p442_p10 = pnand %p440_p9, %p437_p8 }
  0x1a   :  { %445 = shalt.err (!%p442_p10)
}
  0x1b   :  { %s446_s1 = scalar_lea.vmem %s19_s30, 64  ;;  %p451_p12 = scmp.lt.s32.totalorder %s19_s30, %s19_s30 }
  0x1c   :  { %p447_p11 = scmp.ne.s32.totalorder %s19_s30, %s446_s1  ;;  %p452_p13 = scmp.lt.s32.totalorder %s446_s1, %s446_s1 }
  0x1e   :  { %p453_p0 = por %p452_p13, %p451_p12 }
  0x20   :  { %p454_p1 = pnand %p453_p0, %p447_p11 }
  0x22   :  { %457 = shalt.err (!%p454_p1)
}
  0x23   :  { %21 = dma.hbm_to_vmem [thread:$0]  %s626_s0, 64, %s19_s30, [#allocation3]  }
  0x24   :  { %s458_s18 = scalar_lea.hbm %s628_s2, 1024 }
  0x25   :  { %p459_p2 = scmp.ne.s32.totalorder %s628_s2, %s458_s18  ;;  %p462_p3 = scmp.lt.u32.totalorder %s458_s18, %s628_s2 }
  0x27   :  { %p464_p4 = pnand %p462_p3, %p459_p2 }
  0x29   :  { %467 = shalt.err (!%p464_p4)
}
  0x2a   :  { %s468_s23 = scalar_lea.vmem %s40_s6, 1024  ;;  %p473_p6 = scmp.lt.s32.totalorder %s40_s6, %s40_s6 }
  0x2b   :  { %p469_p5 = scmp.ne.s32.totalorder %s40_s6, %s468_s23  ;;  %p474_p7 = scmp.lt.s32.totalorder %s468_s23, %s468_s23 }
  0x2d   :  { %p475_p8 = por %p474_p7, %p473_p6 }
  0x2f   :  { %p476_p9 = pnand %p475_p8, %p469_p5 }
  0x31   :  { %479 = shalt.err (!%p476_p9)
}
  0x32   :  { %s513_s0 = smov 64   ;;  %s514_s24 = smov 4  }
  0x33   :  { %45 = dma.hbm_to_vmem [thread:$0]  %s628_s2, 1024, %s40_s6, [#allocation6], %s513_s0, %s513_s0, %s514_s24  }
  0x34   :  { %502 = dma.done.wait [#allocation3], 64  }
  0x35   :  { %503 = vsyncadd [#allocation3], 4294967232 }
  0x36   :  { %504 = dma.done.wait [#allocation6], 1280  }
  0x37   :  { %505 = vsyncadd [#allocation6], 4294966016  ;;  %v515_v0 = vmov 0.0   ;;  %vm516_vm0 = vmmov 0   ;;  %v59_v1 = vld [vmem:[#allocation5] sm:$0xff]  ;;  %v394_v3 = vld [vmem:[#allocation7] sm:$0xff]  }
  0x38   :  { %358 = vmatprep.subr.bf16.mxu0 %v515_v0  ;;  %366 = vmatprep.mubr.msk.bf16.mxu0 %vm516_vm0, %v515_v0  ;;  %v60_v2 = vpack.c.bf16 %v59_v1, %v59_v1  ;;  %s517_s29 = smov 32   ;;  %v395_v4 = vld [vmem:[#allocation7 + $0x8] sm:$0xff]   ;;  %v396_v5 = vld [vmem:[#allocation7 + $0x10] sm:$0xff]   ;;  %v397_v6 = vld [vmem:[#allocation7 + $0x18] sm:$0xff]   ;;  %vm64_vm1 = vcmask 261120   ;;  %vm107_vm2 = vcmask 523264  }
  0x39   :  { %370 = vmatprep.subr.bf16.mxu1 %v515_v0  ;;  %378 = vmatprep.mubr.msk.bf16.mxu1 %vm516_vm0, %v515_v0  ;;  %v58_v7 = vld [vmem:[#allocation2] sm:$0xf]  ;;  %v186_v24 = vld [vmem:[#allocation5 + $0x8] sm:$0xff]  ;;  %v398_v26 = vld [vmem:[#allocation7 + $0x20] sm:$0xff]   ;;  %s518_s5 = smov 96  }
  0x3a   :  { %62 = vrot.lane.b32.xlu0 %v60_v2, %s517_s29  ;;  %359 = vmatpush3.bf16.msra.mxu0 %v394_v3  ;;  %v333_v10 = vld [vmem:[%s629_s3] ss:$0 sm:$0xff]  ;;  %v187_v25 = vpack.c.bf16 %v186_v24, %v186_v24  ;;  %v400_v29 = vld [vmem:[#allocation7 + $0x30] sm:$0xff]   ;;  %v401_v30 = vld [vmem:[#allocation7 + $0x38] sm:$0xff]  }
  0x3b   :  { %360 = vmatprep.subr.bf16.mxu0 %v515_v0  ;;  %371 = vmatpush3.bf16.msra.mxu1 %v398_v26  ;;  %v399_v27 = vld [vmem:[#allocation7 + $0x28] sm:$0xff]  }
  0x3c   :  { %372 = vmatprep.subr.bf16.mxu1 %v515_v0  ;;  %v341_v41 = vld [vmem:[%s629_s3 + $0x1] ss:$0 sm:$0xff]  ;;  %s519_s3 = smov [#allocation8]  }
  0x3d   :  { %s320_s8 = sshll.u32 %s519_s3, 4  ;;  %s321_s8 = int_to_ptr.vmem [resolvable:$true] %s320_s8 }
  0x3e   :  { %361 = vmatpush3.bf16.msra.mxu0 %v395_v4  ;;  %s480_s9 = scalar_lea.vmem %s321_s8, 256  ;;  %p485_p11 = scmp.lt.s32.totalorder %s321_s8, %s321_s8 }
  0x3f   :  { %362 = vmatprep.subr.bf16.mxu0 %v515_v0  ;;  %373 = vmatpush3.bf16.msra.mxu1 %v399_v27  ;;  %p481_p10 = scmp.ne.s32.totalorder %s321_s8, %s480_s9  ;;  %p486_p12 = scmp.lt.s32.totalorder %s480_s9, %s480_s9 }
  0x40   :  { %374 = vmatprep.subr.bf16.mxu1 %v515_v0 }
  0x41   :  { %p487_p13 = por %p486_p12, %p485_p11 }
  0x42   :  { %363 = vmatpush3.bf16.msra.mxu0 %v396_v5 }
  0x43   :  { %364 = vmatprep.subr.bf16.mxu0 %v515_v0  ;;  %375 = vmatpush3.bf16.msra.mxu1 %v400_v29  ;;  %p488_p0 = pnand %p487_p13, %p481_p10 }
  0x44   :  { %376 = vmatprep.subr.bf16.mxu1 %v515_v0 }
  0x46   :  { %365 = vmatpush3.bf16.msra.mxu0 %v397_v6 }
  0x47   :  { %377 = vmatpush3.bf16.msra.mxu1 %v401_v30 }
  0xac   :  { %v63_v8 = vpop.permute.xlu0 %62 }
  0xad   :  { %v67_v9 = vsel %vm64_vm1, %v58_v7, %v63_v8 }
  0xae   :  { %367 = vmatmul.mubr.msk.bf16.vlgmr.msra.gmra.mrb[0].mxu0 %vm107_vm2, %v67_v9 }
 0x181   :  { %v144_v11 = vpop.f32.mrb[0].mxu0 }
 0x182   :  { %v145_v12 = vadd.f32 %v333_v10, %v144_v11  ;;  %v368_v13 = vpop.f32.mrb[1].mxu0 }
 0x183   :  { %v147_v14 = vpop.f32.mrb[2].mxu0 }
 0x184   :  { %157 = vrot.lane.b32.xlu0 %v145_v12, %s517_s29  ;;  %v369_v15 = vpop.f32.mrb[3].mxu0  ;;  %v339_v16 = vmul.f32 -1.442695, %v145_v12 }
 0x186   :  { %402 = vpow2.f32 %v339_v16 }
 0x188   :  { %174 = vrot.lane.b32.xlu0 %v59_v1, %s517_s29 }
 0x18c   :  { %192 = vrot.lane.b32.xlu0 %v187_v25, %s517_s29 }
 0x190   :  { %v403_v17 = vpop.eup %402 }
 0x191   :  { %v153_v18 = vadd.f32 1.0, %v403_v17 }
 0x193   :  { %404 = vrcp.f32 %v153_v18 }
 0x19d   :  { %v405_v19 = vpop.eup %404 }
 0x19e   :  { %v167_v32 = vsub.f32 1.0, %v405_v19 }
 0x1f6   :  { %v158_v20 = vpop.permute.xlu0 %157 }
 0x1f7   :  { %v160_v21 = vmul.f32 %v405_v19, %v158_v20 }
 0x1f9   :  { %162 = vrot.lane.b32.xlu1 %v160_v21, %s513_s0 }
 0x1fa   :  { %v175_v31 = vpop.permute.xlu0 %174 }
 0x1fb   :  { %v177_v34 = vmul.f32 %v405_v19, %v175_v31 }
 0x1fe   :  { %v193_v38 = vpop.permute.xlu0 %192 }
 0x26b   :  { %v163_v22 = vpop.permute.xlu1 %162 }
 0x26c   :  { %v165_v23 = vadd.f32 %v163_v22, %v145_v12 }
 0x26e   :  { %406 = vtanh.f32 %v165_v23 }
 0x278   :  { %v407_v28 = vpop.eup %406 }
 0x279   :  { %169 = vrot.lane.b32.xlu1 %v407_v28, %s518_s5 }
 0x2eb   :  { %v170_v33 = vpop.permute.xlu1 %169 }
 0x2ec   :  { %v172_v35 = vmul.f32 %v170_v33, %v167_v32 }
 0x2ee   :  { %v178_v36 = vadd.f32 %v177_v34, %v172_v35 }
 0x2f0   :  { %v184_v37 = vpack.c.bf16 %v178_v36, %v178_v36 }
 0x2f2   :  { %189 = vrot.lane.b32.xlu1 %v184_v37, %s518_s5 }
 0x364   :  { %v190_v39 = vpop.permute.xlu1 %189 }
 0x365   :  { %v196_v40 = vsel %vm64_vm1, %v190_v39, %v193_v38 }
 0x366   :  { %379 = vmatmul.mubr.msk.bf16.vlgmr.msra.gmra.mrb[0].mxu1 %vm107_vm2, %v196_v40 }
 0x439   :  { %v274_v42 = vpop.f32.mrb[0].mxu1 }
 0x43a   :  { %v275_v43 = vadd.f32 %v341_v41, %v274_v42  ;;  %v380_v44 = vpop.f32.mrb[1].mxu1 }
 0x43b   :  { %v277_v45 = vpop.f32.mrb[2].mxu1 }
 0x43c   :  { %287 = vrot.lane.b32.xlu1 %v275_v43, %s517_s29  ;;  %v381_v46 = vpop.f32.mrb[3].mxu1  ;;  %v347_v47 = vmul.f32 -1.442695, %v275_v43 }
 0x43e   :  { %408 = vpow2.f32 %v347_v47 }
 0x448   :  { %v409_v48 = vpop.eup %408 }
 0x449   :  { %v283_v49 = vadd.f32 1.0, %v409_v48 }
 0x44b   :  { %410 = vrcp.f32 %v283_v49 }
 0x455   :  { %v411_v50 = vpop.eup %410 }
 0x456   :  { %v297_v57 = vsub.f32 1.0, %v411_v50 }
 0x4ae   :  { %v288_v51 = vpop.permute.xlu1 %287 }
 0x4af   :  { %v290_v52 = vmul.f32 %v411_v50, %v288_v51 }
 0x4b1   :  { %292 = vrot.lane.b32.xlu0 %v290_v52, %s513_s0 }
 0x4b5   :  { %304 = vrot.lane.b32.xlu0 %v186_v24, %s517_s29 }
 0x523   :  { %v293_v53 = vpop.permute.xlu0 %292 }
 0x524   :  { %v295_v54 = vadd.f32 %v293_v53, %v275_v43 }
 0x526   :  { %412 = vtanh.f32 %v295_v54 }
 0x527   :  { %v305_v56 = vpop.permute.xlu0 %304 }
 0x528   :  { %v307_v59 = vmul.f32 %v411_v50, %v305_v56 }
 0x530   :  { %v413_v55 = vpop.eup %412 }
 0x531   :  { %299 = vrot.lane.b32.xlu1 %v413_v55, %s518_s5 }
 0x535   :  { %180 = vrot.lane.b32.xlu1 %v178_v36, %s518_s5 }
 0x5a3   :  { %v300_v58 = vpop.permute.xlu1 %299 }
 0x5a4   :  { %v302_v60 = vmul.f32 %v300_v58, %v297_v57 }
 0x5a6   :  { %v308_v61 = vadd.f32 %v307_v59, %v302_v60 }
 0x5a7   :  { %v181_v62 = vpop.permute.xlu1 %180 }
 0x5a8   :  { %183 = vst.msk [vmem:[#allocation8] sm:$0xff] %vm64_vm1, %v181_v62  ;;  %310 = vrot.lane.b32.xlu0 %v308_v61, %s518_s5 }
 0x61a   :  { %v311_v63 = vpop.permute.xlu0 %310 }
 0x61b   :  { %314 = vst.msk [vmem:[#allocation8 + $0x8] sm:$0xff] %vm64_vm1, %v311_v63 }
 0x61c   :  { %491 = shalt.err (!%p488_p0)
}
 0x61d   :  { %s492_s12 = scalar_lea.hbm %s630_s4, 256 }
 0x61e   :  { %p493_p1 = scmp.ne.s32.totalorder %s630_s4, %s492_s12  ;;  %p496_p2 = scmp.lt.u32.totalorder %s492_s12, %s630_s4 }
 0x620   :  { %p498_p3 = pnand %p496_p2, %p493_p1 }
 0x622   :  { %501 = shalt.err (!%p498_p3)
}
 0x623   :  { %326 = dma.vmem_to_hbm [thread:$0]  %s321_s8, 256, %s630_s4, [#allocation4], %s509_s25, %s509_s25, %s510_s26  }
 0x624   :  { %506 = dma.done.wait [#allocation4], 256  }
 0x625   :  { %507 = vsyncadd [#allocation4], 4294967040 }
 0x626   :  { %330 = vsyncpa [#allocation3], 1 }
 0x627   :  { %331 = vsyncpa [#allocation6], 1 }
 0x628   :  { %332 = vsyncpa [#allocation4], 1 }

</bundles_post_ra>
